<compile_context>
chip_gen: v7x
topology: tpu7x:2x2x1
jax: 0.10.0
libtpu: 0.0.40
codegen_flags: <defaults>
</compile_context>

<pallas_src>
import functools

import jax
import jax.numpy as jnp
from jax.experimental import pallas as pl
from jax.experimental.pallas import tpu as pltpu


def _pointnet_kernel(
    h1_ref,
    w2_ref, b2_ref,
    w3_ref, b3_ref,
    w4_ref, b4_ref,
    w5_ref, b5_ref,
    wf_ref, bf_ref,
    out_ref,
    feat_acc,
    *, tb, tn,
):
    n_idx = pl.program_id(1)

    @pl.when(n_idx == 0)
    def _():
        feat_acc[...] = jnp.full_like(feat_acc, -jnp.inf)

    # (tb, tn, 32) -> (tb*tn, 32); tn is a multiple of 16 so this is a view.
    h = h1_ref[...].reshape(tb * tn, 32)

    def mlp_bn_relu(h, w_ref, b_ref):
        # bf16 x bf16 MXU matmul with f32 accumulation.  The eval-BatchNorm
        # scale is folded into w host-side; bias + ReLU stay in f32 and only
        # the stored activation is cast to bf16 (halves live VMEM footprint).
        y = jnp.dot(h, w_ref[...], preferred_element_type=jnp.float32)
        return jnp.maximum(y + b_ref[...], 0.0).astype(jnp.bfloat16)

    h = mlp_bn_relu(h, w2_ref, b2_ref)   # (tb*tn, 64)
    h = mlp_bn_relu(h, w3_ref, b3_ref)   # (tb*tn, 128)
    h = mlp_bn_relu(h, w4_ref, b4_ref)   # (tb*tn, 256)
    h = mlp_bn_relu(h, w5_ref, b5_ref)   # (tb*tn, 512)

    # Dropout (eval) == identity.
    # Running symmetric max over this (batch-block, point-block) tile.
    blk_max = jnp.max(h.reshape(tb, tn, h.shape[-1]), axis=1)      # (tb, 512)
    feat_acc[...] = jnp.maximum(feat_acc[...], blk_max.astype(jnp.float32))

    @pl.when(n_idx == pl.num_programs(1) - 1)
    def _():
        # Final Linear 512 -> out_pad; tiny, kept in f32 for accuracy.
        out = jnp.dot(feat_acc[...], wf_ref[...],
                      preferred_element_type=jnp.float32)
        out_ref[...] = (out + bf_ref[...])[None, :, :]


def _choose_tiles(B, N, rows_target=2048, sub=16):
    """Pick (tb, tn) so tb*tn ~= rows_target, tn a multiple of 16 (bf16
    sublane packing -> free in-kernel reshapes), and -- whenever B >= 2 --
    at least two batch blocks so the 'parallel' axis can shard across v7x's
    two TensorCores."""
    n_pad = max(sub, ((N + sub - 1) // sub) * sub)
    tn = max(sub, (min(n_pad, rows_target) // sub) * sub)
    n_pad = ((n_pad + tn - 1) // tn) * tn
    tb = max(1, rows_target // tn)
    if B >= 2:
        tb = min(tb, (B + 1) // 2)         # guarantee >= 2 batch blocks
    tb = min(tb, B)
    b_pad = ((B + tb - 1) // tb) * tb
    return tb, tn, b_pad, n_pad


def bigger_point_net_forward(x, params):
    """x: (B, N, 3) float32 -> (B, output_dim) float32 (eval-mode forward)."""
    B, N, _ = x.shape
    (w1, b1, w2, b2, w3, b3, w4, b4, w5, b5, wf, bf) = params
    output_dim = wf.shape[1]

    tb, tn, b_pad, n_pad = _choose_tiles(B, N)
    num_b, num_n = b_pad // tb, n_pad // tn

    # Layer 1 (K=3) + BN1 + ReLU folded host-side: a K=3 matmul would waste
    # >97% of the MXU and a (rows, 3) f32 tile DMAs in 12-byte bursts, so the
    # kernel ingests a lane-friendly (tb, tn, 32) bf16 activation tile.
    h1 = jnp.maximum(
        jnp.einsum("bnc,cd->bnd", x, w1.astype(jnp.float32)) + b1[None], 0.0
    ).astype(jnp.bfloat16)
    # Edge-replicate padding: duplicated points/batches cannot change the max.
    h1 = jnp.pad(h1, ((0, b_pad - B), (0, n_pad - N), (0, 0)), mode="edge")

    # Lane-dense output stores: pad output channels up to a multiple of 128.
    out_pad = max(128, ((output_dim + 127) // 128) * 128)
    if out_pad != output_dim:
        wf = jnp.pad(wf, ((0, 0), (0, out_pad - output_dim)))
        bf = jnp.pad(bf, ((0, 0), (0, out_pad - output_dim)))

    weights = (w2, b2, w3, b3, w4, b4, w5, b5, wf, bf)

    def const_spec(shape):
        nd = len(shape)
        # TODO(synk): these constant-index weight blocks could be marked
        # pipeline_mode=pl.Buffered(1) to drop the redundant second buffer
        # (~0.5 MB VMEM); left default-buffered for maximum compatibility.
        return pl.BlockSpec(shape, lambda b, n, _nd=nd: (0,) * _nd)

    in_specs = [pl.BlockSpec((tb, tn, 32), lambda b, n: (b, n, 0))]
    in_specs += [const_spec(p.shape) for p in weights]
    # 3-D output block keeps its last two dims (tb, out_pad) equal to the full
    # array dims, so any tb (including tb < 8) is layout-legal and lane-dense.
    out_spec = pl.BlockSpec((1, tb, out_pad), lambda b, n: (b, 0, 0))

    out3 = pl.pallas_call(
        functools.partial(_pointnet_kernel, tb=tb, tn=tn),
        out_shape=jax.ShapeDtypeStruct((num_b, tb, out_pad), jnp.float32),
        grid_spec=pltpu.PrefetchScalarGridSpec(
            num_scalar_prefetch=0,
            grid=(num_b, num_n),
            in_specs=in_specs,
            out_specs=out_spec,
            scratch_shapes=[pltpu.VMEM((tb, 512), jnp.float32)],
        ),
        compiler_params=pltpu.CompilerParams(
            dimension_semantics=("parallel", "arbitrary"),
            vmem_limit_bytes=32 * 1024 * 1024,
        ),
    )(h1, *weights)
    out = out3.reshape(b_pad, out_pad)
    return out[:B, :output_dim]


def init_params(key, output_dim=128, eps=1e-5):
    """Deterministic synthetic parameters.

    Linear weights are stored as (in, out) (i.e. W.T of torch.nn.Linear), with
    the eval-BatchNorm scale folded in; layers 1-5 are cast to bf16 for the
    MXU, the final projection stays f32:
        scale = gamma / sqrt(running_var + eps)
        w'    = w * scale            (per output channel)
        bias  = linear_bias * scale + (beta - running_mean * scale)
    """
    dims = [3, 32, 64, 128, 256, 512]
    params = []
    keys = jax.random.split(key, 6 * len(dims))
    ki = 0
    for i in range(len(dims) - 1):
        din, dout = dims[i], dims[i + 1]
        w = 0.1 * jax.random.normal(keys[ki], (din, dout), jnp.float32); ki += 1
        lb = 0.1 * jax.random.normal(keys[ki], (dout,), jnp.float32); ki += 1
        gamma = 1.0 + 0.05 * jax.random.normal(keys[ki], (dout,), jnp.float32); ki += 1
        beta = 0.05 * jax.random.normal(keys[ki], (dout,), jnp.float32); ki += 1
        rmean = 0.05 * jax.random.normal(keys[ki], (dout,), jnp.float32); ki += 1
        rvar = 1.0 + 0.1 * jax.random.uniform(keys[ki], (dout,), jnp.float32); ki += 1
        scale = gamma / jnp.sqrt(rvar + eps)
        w_folded = (w * scale[None, :]).astype(jnp.bfloat16)
        bias = (lb * scale + (beta - rmean * scale)).reshape(1, dout)
        params += [w_folded, bias]
    kf1, kf2 = jax.random.split(keys[ki], 2)
    wf = 0.05 * jax.random.normal(kf1, (dims[-1], output_dim), jnp.float32)
    bf = 0.05 * jax.random.normal(kf2, (output_dim,), jnp.float32)
    params += [wf, bf.reshape(1, output_dim)]
    return tuple(params)


def reference_forward(x, params):
    """Pure-JAX reference (same folded weights, f32 math throughout)."""
    (w1, b1, w2, b2, w3, b3, w4, b4, w5, b5, wf, bf) = params
    h = x
    for w, b in ((w1, b1), (w2, b2), (w3, b3), (w4, b4), (w5, b5)):
        h = jnp.maximum(
            jnp.einsum("bnd,de->bne", h, w.astype(jnp.float32)) + b[None], 0.0)
    feat = jnp.max(h, axis=1)                              # (B, 512)
    return feat @ wf.astype(jnp.float32) + bf              # (B, output_dim)


if __name__ == "__main__":
    B, N, OUT = 2, 8, 128
    key = jax.random.PRNGKey(0)
    kx, kp = jax.random.split(key)
    x = jax.random.normal(kx, (B, N, 3), jnp.float32)
    params = init_params(kp, output_dim=OUT)

    out = jax.block_until_ready(jax.jit(bigger_point_net_forward)(x, params))

    ref = reference_forward(x, params)
    assert out.shape == (B, OUT), out.shape
    # Tolerance covers bf16 activation rounding at the MXU inputs.
    assert jnp.allclose(out, ref, atol=2e-2, rtol=2e-2), (
        float(jnp.max(jnp.abs(out - ref)))
    )
    print("KERNEL_OK")
</pallas_src>

<mosaic_0001>
module attributes {stable_mosaic.version = 11 : i64} {
  func.func @_pointnet_kernel(%arg0: i32, %arg1: i32, %arg2: memref<1x16x32xbf16, #tpu.memory_space<vmem>>, %arg3: memref<32x64xbf16, #tpu.memory_space<vmem>>, %arg4: memref<1x64xf32, #tpu.memory_space<vmem>>, %arg5: memref<64x128xbf16, #tpu.memory_space<vmem>>, %arg6: memref<1x128xf32, #tpu.memory_space<vmem>>, %arg7: memref<128x256xbf16, #tpu.memory_space<vmem>>, %arg8: memref<1x256xf32, #tpu.memory_space<vmem>>, %arg9: memref<256x512xbf16, #tpu.memory_space<vmem>>, %arg10: memref<1x512xf32, #tpu.memory_space<vmem>>, %arg11: memref<512x128xf32, #tpu.memory_space<vmem>>, %arg12: memref<1x128xf32, #tpu.memory_space<vmem>>, %arg13: memref<1x1x128xf32, #tpu.memory_space<vmem>>, %arg14: memref<1x512xf32, #tpu.memory_space<vmem>>) attributes {dimension_semantics = [#tpu.dimension_semantics<parallel>, #tpu.dimension_semantics<arbitrary>], iteration_bounds = array<i64: 2, 1>, scalar_prefetch = 0 : i64, scratch_operands = 1 : i64, tpu.core_type = #tpu.core_type<tc>, window_params = [{transform_indices = @transform_0, window_bounds = array<i64: 1, 16, 32>}, {pipeline_mode = #tpu.pipeline_mode<synchronous>, transform_indices = @transform_1, window_bounds = array<i64: 32, 64>}, {pipeline_mode = #tpu.pipeline_mode<synchronous>, transform_indices = @transform_2, window_bounds = array<i64: 1, 64>}, {pipeline_mode = #tpu.pipeline_mode<synchronous>, transform_indices = @transform_3, window_bounds = array<i64: 64, 128>}, {pipeline_mode = #tpu.pipeline_mode<synchronous>, transform_indices = @transform_4, window_bounds = array<i64: 1, 128>}, {pipeline_mode = #tpu.pipeline_mode<synchronous>, transform_indices = @transform_5, window_bounds = array<i64: 128, 256>}, {pipeline_mode = #tpu.pipeline_mode<synchronous>, transform_indices = @transform_6, window_bounds = array<i64: 1, 256>}, {pipeline_mode = #tpu.pipeline_mode<synchronous>, transform_indices = @transform_7, window_bounds = array<i64: 256, 512>}, {pipeline_mode = #tpu.pipeline_mode<synchronous>, transform_indices = @transform_8, window_bounds = array<i64: 1, 512>}, {pipeline_mode = #tpu.pipeline_mode<synchronous>, transform_indices = @transform_9, window_bounds = array<i64: 512, 128>}, {pipeline_mode = #tpu.pipeline_mode<synchronous>, transform_indices = @transform_10, window_bounds = array<i64: 1, 128>}, {transform_indices = @transform_11, window_bounds = array<i64: 1, 1, 128>}]} {
    %c0_i32 = arith.constant 0 : i32
    %0 = arith.cmpi eq, %arg1, %c0_i32 : i32
    %1 = arith.extui %0 : i1 to i32
    %c0_i32_0 = arith.constant 0 : i32
    %2 = arith.cmpi ne, %1, %c0_i32_0 : i32
    scf.if %2 {
      %cst_33 = arith.constant 0xFF800000 : f32
      %46 = vector.broadcast %cst_33 : f32 to vector<1x512xf32>
      %c0_34 = arith.constant 0 : index
      %c0_35 = arith.constant 0 : index
      %47 = vector.load %arg14[%c0_34, %c0_35] : memref<1x512xf32, #tpu.memory_space<vmem>>, vector<1x512xf32>
      tpu.vector_store %arg14[%c0_34, %c0_35], %46 {strides = array<i32>} : memref<1x512xf32, #tpu.memory_space<vmem>>, vector<1x512xf32>,
    } else {
    }
    %c0 = arith.constant 0 : index
    %c0_1 = arith.constant 0 : index
    %c0_2 = arith.constant 0 : index
    %3 = vector.load %arg2[%c0, %c0_1, %c0_2] : memref<1x16x32xbf16, #tpu.memory_space<vmem>>, vector<1x16x32xbf16>
    %4 = vector.shape_cast %3 : vector<1x16x32xbf16> to vector<16x32xbf16>
    %c0_3 = arith.constant 0 : index
    %c0_4 = arith.constant 0 : index
    %5 = vector.load %arg3[%c0_3, %c0_4] : memref<32x64xbf16, #tpu.memory_space<vmem>>, vector<32x64xbf16>
    %cst = arith.constant dense<0.000000e+00> : vector<16x64xf32>
    %6 = tpu.matmul %4, %5, %cst {dimension_numbers = #tpu.dot_dimension_numbers<[1], [0], [0], [1], [0, 0, 1, 1], [], []>} : vector<16x32xbf16>, vector<32x64xbf16>, vector<16x64xf32> -> vector<16x64xf32>
    %c0_5 = arith.constant 0 : index
    %c0_6 = arith.constant 0 : index
    %7 = vector.load %arg4[%c0_5, %c0_6] : memref<1x64xf32, #tpu.memory_space<vmem>>, vector<1x64xf32>
    %8 = vector.broadcast %7 : vector<1x64xf32> to vector<16x64xf32>
    %9 = arith.addf %6, %8 : vector<16x64xf32>
    %cst_7 = arith.constant 0.000000e+00 : f32
    %10 = vector.broadcast %cst_7 : f32 to vector<16x64xf32>
    %11 = arith.maximumf %9, %10 : vector<16x64xf32>
    %12 = arith.truncf %11 : vector<16x64xf32> to vector<16x64xbf16>
    %c0_8 = arith.constant 0 : index
    %c0_9 = arith.constant 0 : index
    %13 = vector.load %arg5[%c0_8, %c0_9] : memref<64x128xbf16, #tpu.memory_space<vmem>>, vector<64x128xbf16>
    %cst_10 = arith.constant dense<0.000000e+00> : vector<16x128xf32>
    %14 = tpu.matmul %12, %13, %cst_10 {dimension_numbers = #tpu.dot_dimension_numbers<[1], [0], [0], [1], [0, 0, 1, 1], [], []>} : vector<16x64xbf16>, vector<64x128xbf16>, vector<16x128xf32> -> vector<16x128xf32>
    %c0_11 = arith.constant 0 : index
    %c0_12 = arith.constant 0 : index
    %15 = vector.load %arg6[%c0_11, %c0_12] : memref<1x128xf32, #tpu.memory_space<vmem>>, vector<1x128xf32>
    %16 = vector.broadcast %15 : vector<1x128xf32> to vector<16x128xf32>
    %17 = arith.addf %14, %16 : vector<16x128xf32>
    %cst_13 = arith.constant 0.000000e+00 : f32
    %18 = vector.broadcast %cst_13 : f32 to vector<16x128xf32>
    %19 = arith.maximumf %17, %18 : vector<16x128xf32>
    %20 = arith.truncf %19 : vector<16x128xf32> to vector<16x128xbf16>
    %c0_14 = arith.constant 0 : index
    %c0_15 = arith.constant 0 : index
    %21 = vector.load %arg7[%c0_14, %c0_15] : memref<128x256xbf16, #tpu.memory_space<vmem>>, vector<128x256xbf16>
    %cst_16 = arith.constant dense<0.000000e+00> : vector<16x256xf32>
    %22 = tpu.matmul %20, %21, %cst_16 {dimension_numbers = #tpu.dot_dimension_numbers<[1], [0], [0], [1], [0, 0, 1, 1], [], []>} : vector<16x128xbf16>, vector<128x256xbf16>, vector<16x256xf32> -> vector<16x256xf32>
    %c0_17 = arith.constant 0 : index
    %c0_18 = arith.constant 0 : index
    %23 = vector.load %arg8[%c0_17, %c0_18] : memref<1x256xf32, #tpu.memory_space<vmem>>, vector<1x256xf32>
    %24 = vector.broadcast %23 : vector<1x256xf32> to vector<16x256xf32>
    %25 = arith.addf %22, %24 : vector<16x256xf32>
    %cst_19 = arith.constant 0.000000e+00 : f32
    %26 = vector.broadcast %cst_19 : f32 to vector<16x256xf32>
    %27 = arith.maximumf %25, %26 : vector<16x256xf32>
    %28 = arith.truncf %27 : vector<16x256xf32> to vector<16x256xbf16>
    %c0_20 = arith.constant 0 : index
    %c0_21 = arith.constant 0 : index
    %29 = vector.load %arg9[%c0_20, %c0_21] : memref<256x512xbf16, #tpu.memory_space<vmem>>, vector<256x512xbf16>
    %cst_22 = arith.constant dense<0.000000e+00> : vector<16x512xf32>
    %30 = tpu.matmul %28, %29, %cst_22 {dimension_numbers = #tpu.dot_dimension_numbers<[1], [0], [0], [1], [0, 0, 1, 1], [], []>} : vector<16x256xbf16>, vector<256x512xbf16>, vector<16x512xf32> -> vector<16x512xf32>
    %c0_23 = arith.constant 0 : index
    %c0_24 = arith.constant 0 : index
    %31 = vector.load %arg10[%c0_23, %c0_24] : memref<1x512xf32, #tpu.memory_space<vmem>>, vector<1x512xf32>
    %32 = vector.broadcast %31 : vector<1x512xf32> to vector<16x512xf32>
    %33 = arith.addf %30, %32 : vector<16x512xf32>
    %cst_25 = arith.constant 0.000000e+00 : f32
    %34 = vector.broadcast %cst_25 : f32 to vector<16x512xf32>
    %35 = arith.maximumf %33, %34 : vector<16x512xf32>
    %36 = arith.truncf %35 : vector<16x512xf32> to vector<16x512xbf16>
    %37 = vector.shape_cast %36 : vector<16x512xbf16> to vector<1x16x512xbf16>
    %cst_26 = arith.constant dense<0xFF80> : vector<1x512xbf16>
    %38 = vector.multi_reduction <maximumf>, %37, %cst_26 [1] : vector<1x16x512xbf16> to vector<1x512xbf16>
    %c0_27 = arith.constant 0 : index
    %c0_28 = arith.constant 0 : index
    %39 = vector.load %arg14[%c0_27, %c0_28] : memref<1x512xf32, #tpu.memory_space<vmem>>, vector<1x512xf32>
    %40 = arith.extf %38 : vector<1x512xbf16> to vector<1x512xf32>
    %41 = arith.maximumf %39, %40 : vector<1x512xf32>
    %c0_29 = arith.constant 0 : index
    %c0_30 = arith.constant 0 : index
    %42 = vector.load %arg14[%c0_29, %c0_30] : memref<1x512xf32, #tpu.memory_space<vmem>>, vector<1x512xf32>
    tpu.vector_store %arg14[%c0_29, %c0_30], %41 {strides = array<i32>} : memref<1x512xf32, #tpu.memory_space<vmem>>, vector<1x512xf32>,
    %c0_i32_31 = arith.constant 0 : i32
    %43 = arith.cmpi eq, %arg1, %c0_i32_31 : i32
    %44 = arith.extui %43 : i1 to i32
    %c0_i32_32 = arith.constant 0 : i32
    %45 = arith.cmpi ne, %44, %c0_i32_32 : i32
    scf.if %45 {
      %c0_33 = arith.constant 0 : index
      %c0_34 = arith.constant 0 : index
      %46 = vector.load %arg14[%c0_33, %c0_34] : memref<1x512xf32, #tpu.memory_space<vmem>>, vector<1x512xf32>
      %c0_35 = arith.constant 0 : index
      %c0_36 = arith.constant 0 : index
      %47 = vector.load %arg11[%c0_35, %c0_36] : memref<512x128xf32, #tpu.memory_space<vmem>>, vector<512x128xf32>
      %cst_37 = arith.constant dense<0.000000e+00> : vector<1x128xf32>
      %48 = tpu.matmul %46, %47, %cst_37 {dimension_numbers = #tpu.dot_dimension_numbers<[1], [0], [0], [1], [0, 0, 1, 1], [], []>} : vector<1x512xf32>, vector<512x128xf32>, vector<1x128xf32> -> vector<1x128xf32>
      %c0_38 = arith.constant 0 : index
      %c0_39 = arith.constant 0 : index
      %49 = vector.load %arg12[%c0_38, %c0_39] : memref<1x128xf32, #tpu.memory_space<vmem>>, vector<1x128xf32>
      %50 = arith.addf %48, %49 : vector<1x128xf32>
      %51 = vector.shape_cast %50 : vector<1x128xf32> to vector<1x1x128xf32>
      %c0_40 = arith.constant 0 : index
      %c0_41 = arith.constant 0 : index
      %c0_42 = arith.constant 0 : index
      %52 = vector.load %arg13[%c0_40, %c0_41, %c0_42] : memref<1x1x128xf32, #tpu.memory_space<vmem>>, vector<1x1x128xf32>
      tpu.vector_store %arg13[%c0_40, %c0_41, %c0_42], %51 {strides = array<i32>} : memref<1x1x128xf32, #tpu.memory_space<vmem>>, vector<1x1x128xf32>,
    } else {
    }
    return
  }
  func.func @transform_0(%arg0: i32, %arg1: i32) -> (i32, i32, i32) {
    %c0_i32 = arith.constant 0 : i32
    %c0_i32_0 = arith.constant 0 : i32
    return %arg0, %arg1, %c0_i32 : i32, i32, i32
  }
  func.func @transform_1(%arg0: i32, %arg1: i32) -> (i32, i32) {
    %c0_i32 = arith.constant 0 : i32
    %c0_i32_0 = arith.constant 0 : i32
    %c0_i32_1 = arith.constant 0 : i32
    return %c0_i32, %c0_i32_0 : i32, i32
  }
  func.func @transform_2(%arg0: i32, %arg1: i32) -> (i32, i32) {
    %c0_i32 = arith.constant 0 : i32
    %c0_i32_0 = arith.constant 0 : i32
    %c0_i32_1 = arith.constant 0 : i32
    return %c0_i32, %c0_i32_0 : i32, i32
  }
  func.func @transform_3(%arg0: i32, %arg1: i32) -> (i32, i32) {
    %c0_i32 = arith.constant 0 : i32
    %c0_i32_0 = arith.constant 0 : i32
    %c0_i32_1 = arith.constant 0 : i32
    return %c0_i32, %c0_i32_0 : i32, i32
  }
  func.func @transform_4(%arg0: i32, %arg1: i32) -> (i32, i32) {
    %c0_i32 = arith.constant 0 : i32
    %c0_i32_0 = arith.constant 0 : i32
    %c0_i32_1 = arith.constant 0 : i32
    return %c0_i32, %c0_i32_0 : i32, i32
  }
  func.func @transform_5(%arg0: i32, %arg1: i32) -> (i32, i32) {
    %c0_i32 = arith.constant 0 : i32
    %c0_i32_0 = arith.constant 0 : i32
    %c0_i32_1 = arith.constant 0 : i32
    return %c0_i32, %c0_i32_0 : i32, i32
  }
  func.func @transform_6(%arg0: i32, %arg1: i32) -> (i32, i32) {
    %c0_i32 = arith.constant 0 : i32
    %c0_i32_0 = arith.constant 0 : i32
    %c0_i32_1 = arith.constant 0 : i32
    return %c0_i32, %c0_i32_0 : i32, i32
  }
  func.func @transform_7(%arg0: i32, %arg1: i32) -> (i32, i32) {
    %c0_i32 = arith.constant 0 : i32
    %c0_i32_0 = arith.constant 0 : i32
    %c0_i32_1 = arith.constant 0 : i32
    return %c0_i32, %c0_i32_0 : i32, i32
  }
  func.func @transform_8(%arg0: i32, %arg1: i32) -> (i32, i32) {
    %c0_i32 = arith.constant 0 : i32
    %c0_i32_0 = arith.constant 0 : i32
    %c0_i32_1 = arith.constant 0 : i32
    return %c0_i32, %c0_i32_0 : i32, i32
  }
  func.func @transform_9(%arg0: i32, %arg1: i32) -> (i32, i32) {
    %c0_i32 = arith.constant 0 : i32
    %c0_i32_0 = arith.constant 0 : i32
    %c0_i32_1 = arith.constant 0 : i32
    return %c0_i32, %c0_i32_0 : i32, i32
  }
  func.func @transform_10(%arg0: i32, %arg1: i32) -> (i32, i32) {
    %c0_i32 = arith.constant 0 : i32
    %c0_i32_0 = arith.constant 0 : i32
    %c0_i32_1 = arith.constant 0 : i32
    return %c0_i32, %c0_i32_0 : i32, i32
  }
  func.func @transform_11(%arg0: i32, %arg1: i32) -> (i32, i32, i32) {
    %c0_i32 = arith.constant 0 : i32
    %c0_i32_0 = arith.constant 0 : i32
    %c0_i32_1 = arith.constant 0 : i32
    return %arg0, %c0_i32, %c0_i32_0 : i32, i32, i32
  }
}

</mosaic_0001>

<bundles_post_ra>
// kernel: bigger_point_net_forward.1
= control target key start
LH: loop header
LB: loop body
LE: loop exit
PB: predicated region body
PF: predicated region fallthrough
CT: control target
= control target key end

     0   :  { %s2721_s0 = inlined_call_operand.vmem [shape: bf16[2,16,32], index: 0, kind: input, shape index: {}]   ;;  %s2722_s1 = inlined_call_operand.vmem [shape: bf16[32,64], index: 1, kind: input, shape index: {}]   ;;  %s2723_s2 = inlined_call_operand.vmem [shape: f32[1,64], index: 2, kind: input, shape index: {}]   ;;  %s2724_s3 = inlined_call_operand.vmem [shape: bf16[64,128], index: 3, kind: input, shape index: {}]   ;;  %s2725_s4 = inlined_call_operand.vmem [shape: f32[1,128], index: 4, kind: input, shape index: {}]   ;;  %s2726_s5 = inlined_call_operand.hbm [shape: bf16[128,256], index: 5, kind: input, shape index: {}]   ;;  %s2727_s6 = inlined_call_operand.vmem [shape: f32[1,256], index: 6, kind: input, shape index: {}]   ;;  %s2728_s7 = inlined_call_operand.hbm [shape: bf16[256,512], index: 7, kind: input, shape index: {}]   ;;  %s2729_s8 = inlined_call_operand.vmem [shape: f32[1,512], index: 8, kind: input, shape index: {}]   ;;  %s2730_s9 = inlined_call_operand.hbm [shape: f32[512,128], index: 9, kind: input, shape index: {}]   ;;  %s2731_s10 = inlined_call_operand.vmem [shape: f32[1,128], index: 10, kind: input, shape index: {}]   ;;  %s2732_s11 = inlined_call_operand.hbm [shape: f32[2,1,128], index: 11, kind: output, shape index: {}]  }
   0x1   :  { %2745 = sst [smem:[#allocation20_spill]] %s2728_s7 }
   0x2   :  { %2746 = sst [smem:[#allocation21_spill]] %s2732_s11 }
   0x3   :  { %16 = vsyncpa [#allocation4], 0 }
   0x4   :  { %17 = vsyncpa [#allocation7], 0 }
   0x5   :  { %18 = vsyncpa [#allocation5], 0 }
   0x6   :  { %20 = vsyncpa [#allocation5 + $0x1], 0  ;;  %s2453_s17 = smov 0   ;;  %s2455_s18 = smov 0  }
   0x7   :  { %s2457_s19 = smov 0   ;;  %s2459_s20 = smov 0  }
   0x8   :  { %s2461_s21 = smov 0   ;;  %s2463_s22 = smov 0  }
   0x9 LB: > { %2747 = sst [smem:[#allocation13_spill]] %s2358_s17  ;;  %s1716_s23 = sadd.s32 4294967295, %s2378_s22   ;;  %s2378_s22 = sphi %s2463_s22, %s26_s22   ;;  %s2374_s21 = sphi %s2461_s21, %s2774_s21   ;;  %s2370_s20 = sphi %s2459_s20, %s2773_s20   ;;  %s2366_s19 = sphi %s2457_s19, %s2772_s19   ;;  %s2362_s18 = sphi %s2455_s18, %s2776_s18   ;;  %s2358_s17 = sphi %s2453_s17, %s2775_s17  }
   0xa   : > { %2748 = sst [smem:[#allocation14_spill]] %s2366_s19  ;;  %s1717_s24 = sadd.s32 4294967294, %s2378_s22  }
   0xb   : > { %2749 = sst [smem:[#allocation15_spill]] %s2374_s21  ;;  %s38_s25 = sadd.s32 1, %s2374_s21 }
   0xc   : > { %2750 = sst [smem:[#allocation16_spill]] %s2378_s22  ;;  %s283_s26 = sadd.s32 1, %s2366_s19 }
   0xd   : > { %p40_p0 = scmp.ge.s32.totalorder %s38_s25, 2  ;;  %p293_p1 = scmp.ne.s32.totalorder %s2366_s19, %s2362_s18 }
   0xe   : > { %p294_p2 = scmp.eq.s32.totalorder %s1716_s23, 1  ;;  %p299_p3 = scmp.ne.s32.totalorder %s2362_s18, %s2358_s17 }
   0xf   : > { %s2778_s25 = smov (%p40_p0, %s38_s25), 0  ;;  %p300_p5 = scmp.eq.s32.totalorder %s1717_s24, 1 }
  0x10   : > { %2751 = sst [smem:[#allocation17_spill]] %s2778_s25  ;;  %p2493_p4 = por %p294_p2, %p293_p1 }
  0x11   : > { %s280_s28 = ssub.s32 %s2374_s21, %s2778_s25  ;;  %p1718_p6 = scmp.ge.s32.totalorder %s2378_s22, 1 }
  0x12   : > { %s2752_s27 = scalar_select %p2493_p4, 1, 0 }
  0x13   : > { %p281_p7 = scmp.eq.s32.totalorder %s280_s28, 0  ;;  %p2500_p8 = por %p300_p5, %p299_p3 }
  0x14   : > { %p307_p9 = scmp.lt.s32.totalorder %s2378_s22, 3  ;;  %p2512_p11 = scmp.eq.s32.totalorder %s1716_s23, 0 }
  0x15   : > { %s2753_s29 = scalar_select %p2500_p8, 1, 0 }
  0x16   : > { %s2506_s30 = scalar_select %p281_p7, %s2366_s19, %s283_s26  }
  0x17   : > { %2754 = sst [smem:[#allocation18_spill]] %s2753_s29  ;;  %p2508_p10 = pnand %p1718_p6, %p307_p9 }
  0x18   : > { %2755 = sst [smem:[#allocation19_spill]] %s2506_s30  ;;  %s2380_s14 = smov [#allocation6]  }
  0x19   : > { %s2756_s12 = scalar_select %p2508_p10, 1, 0 }
  0x1a   : > { %s2757_s13 = scalar_select %p2512_p11, 1, 0 }
  0x1b   : > { %p2000_p12 = pneg %p2508_p10  ;;  %s347_s15 = sshll.u32 %s2380_s14, 4  ;;  %s348_s15 = int_to_ptr.vmem [resolvable:$true] %s347_s15 }
  0x1c   : > { %s2381_s24 = smov [#allocation3]   ;;  %s2759_s7 = sld [smem:[#allocation20_spill]] }
  0x1d   : > { %p2520_p13 = pnand %p2512_p11, %p2000_p12  ;;  %s331_s26 = sshll.u32 %s2381_s24, 4  ;;  %s332_s26 = int_to_ptr.vmem [resolvable:$true] %s331_s26 }
  0x1f   : > { %p2532_p1 = pneg %p2520_p13 }
  0x22   : > { %s2208_s23 = scalar_lea.hbm %s2759_s7, 8192 }
  0x23   : > { %p2209_p0 = scmp.ne.s32.totalorder %s2759_s7, %s2208_s23  ;;  %p2215_p5 = scmp.lt.u32.totalorder %s2208_s23, %s2759_s7 }
  0x25   : > { %p2211_p2 = pnand %p2532_p1, %p2209_p0 }
  0x27   : > { %p2212_p3 = pneg %p2211_p2 }
  0x29   : > { %p2217_p6 = pnand %p2215_p5, %p2212_p3 }
  0x2b   : > { %2220 = shalt.err (!%p2217_p6)
}
  0x2c   : > { %s2221_s25 = scalar_lea.vmem %s348_s15, 8192  ;;  %p2229_p8 = scmp.lt.s32.totalorder %s348_s15, %s348_s15 }
  0x2d   : > { %p2222_p7 = scmp.ne.s32.totalorder %s348_s15, %s2221_s25  ;;  %p2230_p4 = scmp.lt.s32.totalorder %s2221_s25, %s2221_s25 }
  0x2f   : > { %p2224_p9 = pnand %p2222_p7, %p2532_p1  ;;  %p2231_p11 = por %p2230_p4, %p2229_p8 }
  0x31   : > { %p2225_p12 = pneg %p2224_p9 }
  0x33   : > { %p2232_p10 = pnand %p2231_p11, %p2225_p12 }
  0x35   : > { %2235 = shalt.err (!%p2232_p10)
}
  0x36   : > { %s2382_s21 = smov 256   ;;  %s2383_s30 = smov 16  }
  0x37   : > { %2006 = dma.hbm_to_vmem [thread:$0]  (!%p2520_p13), %s2759_s7, 8192, %s348_s15, [#allocation7], %s2382_s21, %s2382_s21, %s2383_s30  }
  0x38   : > { %s2236_s23 = scalar_lea.hbm %s2726_s5, 2048 }
  0x39   : > { %p2237_p4 = scmp.ne.s32.totalorder %s2726_s5, %s2236_s23  ;;  %p2243_p11 = scmp.lt.u32.totalorder %s2236_s23, %s2726_s5 }
  0x3b   : > { %p2239_p8 = pnand %p2237_p4, %p2532_p1 }
  0x3d   : > { %p2240_p10 = pneg %p2239_p8 }
  0x3f   : > { %p2245_p0 = pnand %p2243_p11, %p2240_p10 }
  0x41   : > { %2248 = shalt.err (!%p2245_p0)
}
  0x42   : > { %s2249_s19 = scalar_lea.vmem %s332_s26, 2048  ;;  %p2257_p6 = scmp.lt.s32.totalorder %s332_s26, %s332_s26 }
  0x43   : > { %p2250_p2 = scmp.ne.s32.totalorder %s332_s26, %s2249_s19  ;;  %p2258_p7 = scmp.lt.s32.totalorder %s2249_s19, %s2249_s19 }
  0x45   : > { %p2252_p3 = pnand %p2250_p2, %p2532_p1  ;;  %p2259_p9 = por %p2258_p7, %p2257_p6 }
  0x47   : > { %p2253_p5 = pneg %p2252_p3 }
  0x49   : > { %p2260_p12 = pnand %p2259_p9, %p2253_p5 }
  0x4b   : > { %2263 = shalt.err (!%p2260_p12)
}
  0x4c   : > { %s2384_s17 = smov 128   ;;  %s2385_s22 = smov 8  }
  0x4d   : > { %2003 = dma.hbm_to_vmem [thread:$0]  (!%p2520_p13), %s2726_s5, 2048, %s332_s26, [#allocation4], %s2384_s17, %s2384_s17, %s2385_s22  }
  0x4e   : > { %s2386_s21 = smov [#allocation8]   ;;  %s2264_s28 = scalar_lea.hbm %s2730_s9, 8192 }
  0x4f   : > { %s363_s30 = sshll.u32 %s2386_s21, 4  ;;  %p2265_p4 = scmp.ne.s32.totalorder %s2730_s9, %s2264_s28  ;;  %s364_s30 = int_to_ptr.vmem [resolvable:$true] %s363_s30 }
  0x50   : > { %p2271_p11 = scmp.lt.u32.totalorder %s2264_s28, %s2730_s9 }
  0x51   : > { %p2267_p8 = pnand %p2265_p4, %p2532_p1 }
  0x53   : > { %p2268_p10 = pneg %p2267_p8 }
  0x55   : > { %p2273_p0 = pnand %p2271_p11, %p2268_p10 }
  0x57   : > { %2276 = shalt.err (!%p2273_p0)
}
  0x58   : > { %s2277_s26 = scalar_lea.vmem %s364_s30, 8192  ;;  %p2285_p6 = scmp.lt.s32.totalorder %s364_s30, %s364_s30 }
  0x59   : > { %p2278_p2 = scmp.ne.s32.totalorder %s364_s30, %s2277_s26  ;;  %p2286_p7 = scmp.lt.s32.totalorder %s2277_s26, %s2277_s26 }
  0x5b   : > { %p2280_p3 = pnand %p2278_p2, %p2532_p1  ;;  %p2287_p9 = por %p2286_p7, %p2285_p6 }
  0x5d   : > { %p2281_p5 = pneg %p2280_p3 }
  0x5f   : > { %p2288_p12 = pnand %p2287_p9, %p2281_p5 }
  0x61   : > { %2291 = shalt.err (!%p2288_p12)
}
  0x62   : > { %2009 = dma.hbm_to_vmem [thread:$0]  (!%p2520_p13), %s2730_s9, 8192, %s364_s30, [#allocation7], %s2384_s17, %s2384_s17, %s2385_s22  }
  0x63   : > { %p2761_p4 = scmp.ne.s32.totalorder %s2756_s12, 0 }
  0x64   : > { %p2762_p8 = scmp.ne.s32.totalorder (!%p2761_p4), %s2757_s13, 0 }
  0x65   : > { %395 = sbr.rel (%p2761_p4) target bundleno = 1277 (0x4fd), region = 64 }
  0x6c   : > { %2345 = dma.done.wait (%p2762_p8), [#allocation4], 2048  }
  0x6d   : > { %2347 = vsyncadd (%p2762_p8), [#allocation4], 4294965248 }
  0x6e   : > { %2349 = dma.done.wait (%p2762_p8), [#allocation7], 16384  }
  0x6f   : > { %2351 = vsyncadd (%p2762_p8), [#allocation7], 4294950912  ;;  %p447_p1 = scmp.lt.s32.totalorder %s2370_s20, 1  ;;  %v2387_v0 = vmov 0.0   ;;  %vm2388_vm0 = vmmov 0   ;;  %v2081_v1 = vld [vmem:[%s2722_s1] sm:$0xff]   ;;  %v461_v63 = vlaneseq }
  0x70   : > { %1902 = vmatprep.subr.bf16.mxu1 %v2387_v0  ;;  %1906 = vmatprep.mubr.msk.bf16.mxu1 %vm2388_vm0, %v2387_v0  ;;  %v2082_v2 = vld [vmem:[%s2722_s1 + $0x8] sm:$0xff]   ;;  %v2084_v4 = vld [vmem:[%s2724_s3] sm:$0xff]   ;;  %vm496_vm1 = vcmask 261120   ;;  %v2086_v6 = vld [vmem:[%s2724_s3 + $0x10] sm:$0xff]   ;;  %vm583_vm2 = vcmask 523264   ;;  %v2389_v34 = vmov 0  }
  0x71   : > { %s448_s7 = scalar_select %p447_p1, %s2370_s20, 1  ;;  %1903 = vmatpush3.bf16.msra.mxu1 %v2081_v1  ;;  %v2085_v5 = vld [vmem:[%s2724_s3 + $0x8] sm:$0xff]   ;;  %v2087_v7 = vld [vmem:[%s2724_s3 + $0x18] sm:$0xff]   ;;  %v1729_v20 = vld [vmem:[%s2723_s2] ss:$0 sm:$0xff]  ;;  %771 = vmatprep.mubr.bf16.mxu0 %v2389_v34  ;;  %vm2623_vm3 = vcmp.lt.s32.totalorder %v461_v63, 512 }
  0x72   : > { %1904 = vmatprep.subr.bf16.mxu1 %v2387_v0  ;;  %v2088_v8 = vld [vmem:[#allocation3 + $0x4] ss:$8 sps:$4 sm:$0xff]   ;;  %v2090_v9 = vld [vmem:[#allocation3] ss:$8 sps:$4 sm:$0xff]   ;;  %v2091_v10 = vld [vmem:[#allocation3 + $0x14] ss:$8 sps:$4 sm:$0xff]  }
  0x73   : > { %s1823_s12 = sshll.u32 %s448_s7, 3  ;;  %739 = vmatprep.subr.bf16.mxu0 %v2088_v8  ;;  %v2093_v11 = vld [vmem:[#allocation3 + $0x10] ss:$8 sps:$4 sm:$0xff]   ;;  %v2094_v12 = vld [vmem:[#allocation3 + $0x24] ss:$8 sps:$4 sm:$0xff]   ;;  %s444_s13 = sand.u32 1, %s2362_s18  }
  0x74   : > { %s454_s21 = scalar_lea.vmem %s2721_s0, %s1823_s12  ;;  %740 = vmatpush1.bf16.msra.mxu0 %v2090_v9  ;;  %v2096_v13 = vld [vmem:[#allocation3 + $0x20] ss:$8 sps:$4 sm:$0xff]   ;;  %v2097_v14 = vld [vmem:[#allocation3 + $0x34] ss:$8 sps:$4 sm:$0xff]   ;;  %v2099_v15 = vld [vmem:[#allocation3 + $0x30] ss:$8 sps:$4 sm:$0xff]  }
  0x75   : > { %v2083_v3 = vld [vmem:[%s454_s21] sm:$0xff]   ;;  %1905 = vmatpush3.bf16.msra.mxu1 %v2082_v2  ;;  %741 = vmatprep.subr.bf16.mxu0 %v2091_v10  ;;  %v2100_v16 = vld [vmem:[#allocation3 + $0x44] ss:$8 sps:$4 sm:$0xff]   ;;  %v2105_v19 = vld [vmem:[#allocation3 + $0x50] ss:$8 sps:$4 sm:$0xff]   ;;  %v2390_v2 = vmov -inf  }
  0x76   : > { %1910 = vmatprep.subr.bf16.mxu1 %v2387_v0  ;;  %v2102_v17 = vld [vmem:[#allocation3 + $0x40] ss:$8 sps:$4 sm:$0xff]   ;;  %v2103_v18 = vld [vmem:[#allocation3 + $0x54] ss:$8 sps:$4 sm:$0xff]   ;;  %v2106_v30 = vld [vmem:[#allocation3 + $0x64] ss:$8 sps:$4 sm:$0xff]  }
  0x77   : > { %v2108_v31 = vld [vmem:[#allocation3 + $0x60] ss:$8 sps:$4 sm:$0xff]   ;;  %v2109_v32 = vld [vmem:[#allocation3 + $0x74] ss:$8 sps:$4 sm:$0xff]   ;;  %v2111_v33 = vld [vmem:[#allocation3 + $0x70] ss:$8 sps:$4 sm:$0xff]  }
  0x78   : > { %1907 = vmatmul.mubr.msk.bf16.vlgmr.msra.gmra.mrb[0].mxu1 %vm496_vm1, %v2083_v3  ;;  %742 = vmatpush1.bf16.msra.mxu0 %v2093_v11  ;;  %v2112_v35 = vld [vmem:[#allocation6] ss:$16 sps:$4 sm:$0xff]   ;;  %v2114_v36 = vld [vmem:[#allocation6 + $0x4] ss:$16 sps:$4 sm:$0xff]   ;;  %v2117_v37 = vld [vmem:[#allocation6 + $0xc] ss:$16 sps:$4 sm:$0xff]  }
  0x79   : > { %1911 = vmatpush3.bf16.msra.mxu1 %v2084_v4  ;;  %1918 = vmatprep.mubr.msk.bf16.mxu1 %vm2388_vm0, %v2387_v0  ;;  %v2120_v38 = vld [vmem:[#allocation6 + $0x24] ss:$16 sps:$4 sm:$0xff]   ;;  %v2118_v39 = vld [vmem:[#allocation6 + $0x20] ss:$16 sps:$4 sm:$0xff]   ;;  %465 = vst.msk [vmem:[#allocation2] sm:$0xf] %vm2623_vm3, %v2390_v2 }
  0x7a   : > { %1912 = vmatprep.subr.bf16.mxu1 %v2387_v0  ;;  %743 = vmatprep.subr.bf16.mxu0 %v2094_v12  ;;  %v2126_v40 = vld [vmem:[#allocation6 + $0x44] ss:$16 sps:$4 sm:$0xff]   ;;  %v2124_v41 = vld [vmem:[#allocation6 + $0x40] ss:$16 sps:$4 sm:$0xff]   ;;  %v1734_v3 = vld [vmem:[%s2725_s4] ss:$0 sm:$0xff] }
  0x7b   : > { %v2132_v42 = vld [vmem:[#allocation6 + $0x64] ss:$16 sps:$4 sm:$0xff]   ;;  %v2130_v43 = vld [vmem:[#allocation6 + $0x60] ss:$16 sps:$4 sm:$0xff]   ;;  %v2115_v12 = vld [vmem:[#allocation6 + $0x8] ss:$16 sps:$4 sm:$0xff]  }
  0x7c   : > { %744 = vmatpush1.bf16.msra.mxu0 %v2096_v13  ;;  %v2138_v44 = vld [vmem:[#allocation6 + $0x84] ss:$16 sps:$4 sm:$0xff]   ;;  %v2136_v45 = vld [vmem:[#allocation6 + $0x80] ss:$16 sps:$4 sm:$0xff]   ;;  %v2183_v34 = vld [vmem:[#allocation6 + $0x16c] ss:$16 sps:$4 sm:$0xff]  }
  0x7d   : > { %1913 = vmatpush3.bf16.msra.mxu1 %v2085_v5  ;;  %745 = vmatprep.subr.bf16.mxu0 %v2097_v14  ;;  %v2144_v46 = vld [vmem:[#allocation6 + $0xa4] ss:$16 sps:$4 sm:$0xff]   ;;  %v2142_v47 = vld [vmem:[#allocation6 + $0xa0] ss:$16 sps:$4 sm:$0xff]   ;;  %v2123_v14 = vld [vmem:[#allocation6 + $0x2c] ss:$16 sps:$4 sm:$0xff]  }
  0x7e   : > { %1914 = vmatprep.subr.bf16.mxu1 %v2387_v0  ;;  %v2150_v48 = vld [vmem:[#allocation6 + $0xc4] ss:$16 sps:$4 sm:$0xff]   ;;  %v2148_v49 = vld [vmem:[#allocation6 + $0xc0] ss:$16 sps:$4 sm:$0xff]   ;;  %s1820_s24 = sshll.u32 %s2370_s20, 4  ;;  %s445_s28 = scalar_lea.vmem [#allocation9], %s444_s13 }
  0x7f   : > { %v2156_v50 = vld [vmem:[#allocation6 + $0xe4] ss:$16 sps:$4 sm:$0xff]   ;;  %v2154_v51 = vld [vmem:[#allocation6 + $0xe0] ss:$16 sps:$4 sm:$0xff]   ;;  %s1616_s23 = sshll.u32 %s445_s28, 4  ;;  %s2765_s26 = sld [smem:[#allocation21_spill]]  ;;  %s2676_s23 = int_to_ptr.vmem [resolvable:$true] %s1616_s23 }
  0x80   : > { %746 = vmatpush1.bf16.msra.mxu0 %v2099_v15  ;;  %v2162_v52 = vld [vmem:[#allocation6 + $0x104] ss:$16 sps:$4 sm:$0xff]   ;;  %v2160_v53 = vld [vmem:[#allocation6 + $0x100] ss:$16 sps:$4 sm:$0xff]   ;;  %v2121_v15 = vld [vmem:[#allocation6 + $0x28] ss:$16 sps:$4 sm:$0xff]  }
  0x81   : > { %1915 = vmatpush3.bf16.msra.mxu1 %v2086_v6  ;;  %747 = vmatprep.subr.bf16.mxu0 %v2100_v16  ;;  %v2168_v54 = vld [vmem:[#allocation6 + $0x124] ss:$16 sps:$4 sm:$0xff]   ;;  %v2166_v55 = vld [vmem:[#allocation6 + $0x120] ss:$16 sps:$4 sm:$0xff]   ;;  %v2129_v16 = vld [vmem:[#allocation6 + $0x4c] ss:$16 sps:$4 sm:$0xff]  }
  0x82   : > { %1916 = vmatprep.subr.bf16.mxu1 %v2387_v0  ;;  %v2174_v56 = vld [vmem:[#allocation6 + $0x144] ss:$16 sps:$4 sm:$0xff]   ;;  %v2172_v57 = vld [vmem:[#allocation6 + $0x140] ss:$16 sps:$4 sm:$0xff]   ;;  %s1604_s15 = scalar_lea.sflag [#allocation5], %s444_s13  ;;  %s2292_s7 = scalar_lea.vmem %s2676_s23, 16 }
  0x83   : > { %v2180_v58 = vld [vmem:[#allocation6 + $0x164] ss:$16 sps:$4 sm:$0xff]   ;;  %v2178_v59 = vld [vmem:[#allocation6 + $0x160] ss:$16 sps:$4 sm:$0xff]   ;;  %p2293_p13 = scmp.ne.s32.totalorder %s2676_s23, %s2292_s7  ;;  %p2766_p10 = scmp.ne.s32.totalorder %s2752_s27, 0 }
  0x84   : > { %748 = vmatpush1.bf16.msra.mxu0 %v2102_v17  ;;  %v2186_v60 = vld [vmem:[#allocation6 + $0x184] ss:$16 sps:$4 sm:$0xff]   ;;  %v2184_v61 = vld [vmem:[#allocation6 + $0x180] ss:$16 sps:$4 sm:$0xff]   ;;  %v2127_v17 = vld [vmem:[#allocation6 + $0x48] ss:$16 sps:$4 sm:$0xff]  }
  0x85   : > { %1917 = vmatpush3.bf16.msra.mxu1 %v2087_v7  ;;  %749 = vmatprep.subr.bf16.mxu0 %v2103_v18  ;;  %v2192_v62 = vld [vmem:[#allocation6 + $0x1a4] ss:$16 sps:$4 sm:$0xff]   ;;  %v2190_v0 = vld [vmem:[#allocation6 + $0x1a0] ss:$16 sps:$4 sm:$0xff]   ;;  %v2135_v18 = vld [vmem:[#allocation6 + $0x6c] ss:$16 sps:$4 sm:$0xff]   ;;  %s2674_s11 = scalar_lea.hbm %s2765_s26, %s1820_s24  ;;  %p2294_p11 = pnand %p2293_p13, %p2766_p10 }
  0x86   : > { %1194 = vmatprep.subr.bf16.mxu1 %v2114_v36  ;;  %v2189_v36 = vld [vmem:[#allocation6 + $0x18c] ss:$16 sps:$4 sm:$0xff]   ;;  %s2392_s20 = smov [#allocation9]  }
  0x87   : > { %p2295_p0 = pneg %p2294_p11  ;;  %s2296_s12 = sshll.u32 %s2392_s20, 4  ;;  %s2297_s12 = int_to_ptr.vmem [resolvable:$false] %s2296_s12 }
  0x88   : > { %750 = vmatpush1.bf16.msra.mxu0 %v2105_v19  ;;  %v2133_v19 = vld [vmem:[#allocation6 + $0x68] ss:$16 sps:$4 sm:$0xff]   ;;  %s2298_s16 = scalar_lea.vmem %s2297_s12, 32  ;;  %p2299_p2 = scmp.lt.s32.totalorder %s2676_s23, %s2297_s12 }
  0x89   : > { %751 = vmatprep.subr.bf16.mxu0 %v2106_v30  ;;  %v2171_v30 = vld [vmem:[#allocation6 + $0x12c] ss:$16 sps:$4 sm:$0xff]   ;;  %p2300_p3 = scmp.lt.s32.totalorder %s2298_s16, %s2292_s7 }
  0x8b   : > { %p2301_p5 = por %p2300_p3, %p2299_p2 }
  0x8c   : > { %752 = vmatpush1.bf16.msra.mxu0 %v2108_v31  ;;  %v2169_v31 = vld [vmem:[#allocation6 + $0x128] ss:$16 sps:$4 sm:$0xff]  }
  0x8d   : > { %753 = vmatprep.subr.bf16.mxu0 %v2109_v32  ;;  %v2177_v32 = vld [vmem:[#allocation6 + $0x14c] ss:$16 sps:$4 sm:$0xff]   ;;  %p2302_p6 = pnand %p2301_p5, %p2295_p0 }
  0x90   : > { %754 = vmatpush1.bf16.msra.mxu0 %v2111_v33  ;;  %v2175_v33 = vld [vmem:[#allocation6 + $0x148] ss:$16 sps:$4 sm:$0xff]  }
  0x91   : > { %1237 = vmatprep.subr.bf16.mxu0 %v2117_v37  ;;  %v2187_v37 = vld [vmem:[#allocation6 + $0x188] ss:$16 sps:$4 sm:$0xff]  }
 0x14b   : > { %v534_v21 = vpop.f32.mrb[0].mxu1 }
 0x14c   : > { %v535_v22 = vadd.f32 %v1729_v20, %v534_v21  ;;  %v1908_v23 = vpop.f32.mrb[1].mxu1  ;;  %v2139_v21 = vld [vmem:[#allocation6 + $0x88] ss:$16 sps:$4 sm:$0xff]  }
 0x14d   : > { %v537_v24 = vpop.f32.mrb[2].mxu1  ;;  %v2145_v23 = vld [vmem:[#allocation6 + $0xa8] ss:$16 sps:$4 sm:$0xff]  }
 0x14e   : > { %v538_v25 = vadd.f32 %v1729_v20, %v537_v24  ;;  %v1909_v26 = vpop.f32.mrb[3].mxu1  ;;  %v541_v27 = vmax.f32 %v535_v22, 0.0  ;;  %v2141_v20 = vld [vmem:[#allocation6 + $0x8c] ss:$16 sps:$4 sm:$0xff]  }
 0x14f   : > { %v2147_v22 = vld [vmem:[#allocation6 + $0xac] ss:$16 sps:$4 sm:$0xff]  }
 0x150   : > { %v542_v28 = vmax.f32 %v538_v25, 0.0  ;;  %v2153_v24 = vld [vmem:[#allocation6 + $0xcc] ss:$16 sps:$4 sm:$0xff]   ;;  %v2151_v25 = vld [vmem:[#allocation6 + $0xc8] ss:$16 sps:$4 sm:$0xff]  }
 0x151   : > { %v2159_v26 = vld [vmem:[#allocation6 + $0xec] ss:$16 sps:$4 sm:$0xff]  }
 0x152   : > { %v543_v29 = vpack.c.bf16 %v542_v28, %v541_v27  ;;  %v2157_v27 = vld [vmem:[#allocation6 + $0xe8] ss:$16 sps:$4 sm:$0xff]   ;;  %v2165_v28 = vld [vmem:[#allocation6 + $0x10c] ss:$16 sps:$4 sm:$0xff]  }
 0x154   : > { %1919 = vmatmul.mubr.msk.bf16.vlgmr.msra.gmra.mrb[4].mxu1 %vm583_vm2, %v543_v29  ;;  %v2163_v29 = vld [vmem:[#allocation6 + $0x108] ss:$16 sps:$4 sm:$0xff]  }
 0x155   : > { %1195 = vmatpush1.bf16.msra.mxu1 %v2112_v35  ;;  %v2181_v35 = vld [vmem:[#allocation6 + $0x168] ss:$16 sps:$4 sm:$0xff]  }
 0x156   : > { %1196 = vmatprep.subr.bf16.mxu1 %v2120_v38  ;;  %v2195_v38 = vld [vmem:[#allocation6 + $0x1ac] ss:$16 sps:$4 sm:$0xff]  }
 0x159   : > { %1197 = vmatpush1.bf16.msra.mxu1 %v2118_v39  ;;  %v2193_v39 = vld [vmem:[#allocation6 + $0x1a8] ss:$16 sps:$4 sm:$0xff]  }
 0x15a   : > { %1198 = vmatprep.subr.bf16.mxu1 %v2126_v40  ;;  %v2198_v40 = vld [vmem:[#allocation6 + $0x1c4] ss:$16 sps:$4 sm:$0xff]  }
 0x15d   : > { %1199 = vmatpush1.bf16.msra.mxu1 %v2124_v41  ;;  %v2201_v41 = vld [vmem:[#allocation6 + $0x1cc] ss:$16 sps:$4 sm:$0xff]  }
 0x15e   : > { %1200 = vmatprep.subr.bf16.mxu1 %v2132_v42  ;;  %v2196_v42 = vld [vmem:[#allocation6 + $0x1c0] ss:$16 sps:$4 sm:$0xff]  }
 0x161   : > { %1201 = vmatpush1.bf16.msra.mxu1 %v2130_v43  ;;  %v2199_v43 = vld [vmem:[#allocation6 + $0x1c8] ss:$16 sps:$4 sm:$0xff]  }
 0x162   : > { %1202 = vmatprep.subr.bf16.mxu1 %v2138_v44  ;;  %v2204_v44 = vld [vmem:[#allocation6 + $0x1e4] ss:$16 sps:$4 sm:$0xff]  }
 0x165   : > { %1203 = vmatpush1.bf16.msra.mxu1 %v2136_v45  ;;  %v2207_v45 = vld [vmem:[#allocation6 + $0x1ec] ss:$16 sps:$4 sm:$0xff]  }
 0x166   : > { %1204 = vmatprep.subr.bf16.mxu1 %v2144_v46  ;;  %v2202_v46 = vld [vmem:[#allocation6 + $0x1e0] ss:$16 sps:$4 sm:$0xff]  }
 0x169   : > { %1205 = vmatpush1.bf16.msra.mxu1 %v2142_v47  ;;  %v2205_v47 = vld [vmem:[#allocation6 + $0x1e8] ss:$16 sps:$4 sm:$0xff]  }
 0x16a   : > { %1206 = vmatprep.subr.bf16.mxu1 %v2150_v48  ;;  %v2633_v48 = vshrl.u32 %v461_v63, 7 }
 0x16d   : > { %1207 = vmatpush1.bf16.msra.mxu1 %v2148_v49  ;;  %v2636_v49 = vsub.s32 0, %v2633_v48 }
 0x16e   : > { %1208 = vmatprep.subr.bf16.mxu1 %v2156_v50  ;;  %v647_v50 = vld [vmem:[%s2727_s6] sm:$0x3] }
 0x171   : > { %1209 = vmatpush1.bf16.msra.mxu1 %v2154_v51  ;;  %v2642_v51 = vsub.s32 1, %v2633_v48 }
 0x172   : > { %1210 = vmatprep.subr.bf16.mxu1 %v2162_v52  ;;  %v652_v52 = vrot.slane %v647_v50, %v2636_v49 }
 0x175   : > { %1211 = vmatpush1.bf16.msra.mxu1 %v2160_v53  ;;  %v656_v53 = vrot.slane %v647_v50, %v2642_v51 }
 0x176   : > { %1212 = vmatprep.subr.bf16.mxu1 %v2168_v54 }
 0x179   : > { %1213 = vmatpush1.bf16.msra.mxu1 %v2166_v55 }
 0x17a   : > { %1214 = vmatprep.subr.bf16.mxu1 %v2174_v56 }
 0x17d   : > { %1215 = vmatpush1.bf16.msra.mxu1 %v2172_v57 }
 0x17e   : > { %1216 = vmatprep.subr.bf16.mxu1 %v2180_v58 }
 0x181   : > { %1217 = vmatpush1.bf16.msra.mxu1 %v2178_v59 }
 0x182   : > { %1218 = vmatprep.subr.bf16.mxu1 %v2186_v60 }
 0x185   : > { %1219 = vmatpush1.bf16.msra.mxu1 %v2184_v61 }
 0x186   : > { %1220 = vmatprep.subr.bf16.mxu1 %v2192_v62 }
 0x189   : > { %1221 = vmatpush1.bf16.msra.mxu1 %v2190_v0 }
 0x18a   : > { %1222 = vmatprep.subr.bf16.mxu1 %v2198_v40 }
 0x18d   : > { %1223 = vmatpush1.bf16.msra.mxu1 %v2196_v42  ;;  %v1399_v42 = vld [vmem:[#allocation8 + $0xb8] sm:$0xff] }
 0x18e   : > { %1224 = vmatprep.subr.bf16.mxu1 %v2204_v44 }
 0x191   : > { %1225 = vmatpush1.bf16.msra.mxu1 %v2202_v46  ;;  %v1382_v46 = vld [vmem:[#allocation8 + $0x30] sm:$0xff] }
 0x227   : > { %v621_v4 = vpop.f32.mrb[4].mxu1 }
 0x228   : > { %v622_v5 = vadd.f32 %v1734_v3, %v621_v4  ;;  %v1920_v6 = vpop.f32.mrb[5].mxu1 }
 0x229   : > { %v624_v7 = vpop.f32.mrb[6].mxu1  ;;  %v1393_v6 = vld [vmem:[#allocation8 + $0x88] sm:$0xff] }
 0x22a   : > { %v625_v8 = vadd.f32 %v1734_v3, %v624_v7  ;;  %v1921_v9 = vpop.f32.mrb[7].mxu1  ;;  %v628_v10 = vmax.f32 %v622_v5, 0.0  ;;  %v1392_v5 = vld [vmem:[#allocation8 + $0x80] sm:$0xff] }
 0x22b   : > { %v1424_v7 = vld [vmem:[#allocation8 + $0x180] sm:$0xff]  ;;  %v1425_v9 = vld [vmem:[#allocation8 + $0x188] sm:$0xff] }
 0x22c   : > { %v629_v11 = vmax.f32 %v625_v8, 0.0  ;;  %v1922_v8 = vpack.c.bf16 %v1393_v6, %v1392_v5  ;;  %v1402_v5 = vld [vmem:[#allocation8 + $0xd0] sm:$0xff]  ;;  %v1403_v6 = vld [vmem:[#allocation8 + $0xd8] sm:$0xff] }
 0x22e   : > { %v630_v13 = vpack.c.bf16 %v629_v11, %v628_v10  ;;  %v1376_v10 = vld [vmem:[#allocation8] sm:$0xff]  ;;  %v1377_v11 = vld [vmem:[#allocation8 + $0x8] sm:$0xff]  ;;  %1923 = vmatprep.subr.bf16.mxu1 %v1922_v8  ;;  %v1942_v8 = vpack.c.bf16 %v1403_v6, %v1402_v5 }
 0x230   : > { %772 = vmatmul.mubr.bf16.vlgmr.msra.gmra.mrb[0].mxu0 %v630_v13  ;;  %v1924_v13 = vpack.c.bf16 %v1377_v11, %v1376_v10  ;;  %v1386_v10 = vld [vmem:[#allocation8 + $0x50] sm:$0xff]  ;;  %v1387_v11 = vld [vmem:[#allocation8 + $0x58] sm:$0xff] }
 0x231   : > { %1238 = vmatpush1.bf16.msra.mxu0 %v2115_v12  ;;  %v1954_v12 = vpack.c.bf16 %v1425_v9, %v1424_v7  ;;  %v1434_v7 = vld [vmem:[#allocation8 + $0x1d0] sm:$0xff]  ;;  %v1435_v9 = vld [vmem:[#allocation8 + $0x1d8] sm:$0xff] }
 0x232   : > { %1239 = vmatprep.subr.bf16.mxu0 %v2123_v14  ;;  %v1408_v14 = vld [vmem:[#allocation8 + $0x100] sm:$0xff] }
 0x235   : > { %1240 = vmatpush1.bf16.msra.mxu0 %v2121_v15  ;;  %v1409_v15 = vld [vmem:[#allocation8 + $0x108] sm:$0xff] }
 0x236   : > { %1241 = vmatprep.subr.bf16.mxu0 %v2129_v16  ;;  %v1956_v16 = vpack.c.bf16 %v1409_v15, %v1408_v14  ;;  %v1418_v14 = vld [vmem:[#allocation8 + $0x150] sm:$0xff]  ;;  %v1419_v15 = vld [vmem:[#allocation8 + $0x158] sm:$0xff] }
 0x239   : > { %1242 = vmatpush1.bf16.msra.mxu0 %v2127_v17  ;;  %v1394_v17 = vld [vmem:[#allocation8 + $0x90] sm:$0xff] }
 0x23a   : > { %1243 = vmatprep.subr.bf16.mxu0 %v2135_v18  ;;  %v1395_v18 = vld [vmem:[#allocation8 + $0x98] sm:$0xff] }
 0x23d   : > { %1244 = vmatpush1.bf16.msra.mxu0 %v2133_v19  ;;  %v1426_v19 = vld [vmem:[#allocation8 + $0x190] sm:$0xff] }
 0x23e   : > { %1245 = vmatprep.subr.bf16.mxu0 %v2141_v20  ;;  %v1926_v20 = vpack.c.bf16 %v1395_v18, %v1394_v17  ;;  %v1404_v17 = vld [vmem:[#allocation8 + $0xe0] sm:$0xff]  ;;  %v1405_v18 = vld [vmem:[#allocation8 + $0xe8] sm:$0xff] }
 0x241   : > { %1246 = vmatpush1.bf16.msra.mxu0 %v2139_v21  ;;  %v1427_v21 = vld [vmem:[#allocation8 + $0x198] sm:$0xff] }
 0x242   : > { %1247 = vmatprep.subr.bf16.mxu0 %v2147_v22  ;;  %v1378_v22 = vld [vmem:[#allocation8 + $0x10] sm:$0xff] }
 0x245   : > { %1248 = vmatpush1.bf16.msra.mxu0 %v2145_v23  ;;  %v1379_v23 = vld [vmem:[#allocation8 + $0x18] sm:$0xff] }
 0x246   : > { %1249 = vmatprep.subr.bf16.mxu0 %v2153_v24  ;;  %v1958_v24 = vpack.c.bf16 %v1427_v21, %v1426_v19  ;;  %v1436_v19 = vld [vmem:[#allocation8 + $0x1e0] sm:$0xff]  ;;  %v1437_v21 = vld [vmem:[#allocation8 + $0x1e8] sm:$0xff] }
 0x249   : > { %1250 = vmatpush1.bf16.msra.mxu0 %v2151_v25  ;;  %v1928_v25 = vpack.c.bf16 %v1379_v23, %v1378_v22  ;;  %v1388_v22 = vld [vmem:[#allocation8 + $0x60] sm:$0xff]  ;;  %v1389_v23 = vld [vmem:[#allocation8 + $0x68] sm:$0xff] }
 0x24a   : > { %1251 = vmatprep.subr.bf16.mxu0 %v2159_v26  ;;  %v1410_v26 = vld [vmem:[#allocation8 + $0x110] sm:$0xff] }
 0x24d   : > { %1252 = vmatpush1.bf16.msra.mxu0 %v2157_v27  ;;  %v1411_v27 = vld [vmem:[#allocation8 + $0x118] sm:$0xff] }
 0x24e   : > { %1253 = vmatprep.subr.bf16.mxu0 %v2165_v28  ;;  %v1960_v28 = vpack.c.bf16 %v1411_v27, %v1410_v26  ;;  %v1420_v26 = vld [vmem:[#allocation8 + $0x160] sm:$0xff]  ;;  %v1421_v27 = vld [vmem:[#allocation8 + $0x168] sm:$0xff] }
 0x251   : > { %1254 = vmatpush1.bf16.msra.mxu0 %v2163_v29  ;;  %v1396_v29 = vld [vmem:[#allocation8 + $0xa0] sm:$0xff] }
 0x252   : > { %1255 = vmatprep.subr.bf16.mxu0 %v2171_v30  ;;  %v1397_v30 = vld [vmem:[#allocation8 + $0xa8] sm:$0xff] }
 0x255   : > { %1256 = vmatpush1.bf16.msra.mxu0 %v2169_v31  ;;  %v1428_v31 = vld [vmem:[#allocation8 + $0x1a0] sm:$0xff] }
 0x256   : > { %1257 = vmatprep.subr.bf16.mxu0 %v2177_v32  ;;  %v1930_v32 = vpack.c.bf16 %v1397_v30, %v1396_v29  ;;  %v1980_v29 = vpack.c.bf16 %v1421_v27, %v1420_v26  ;;  %v1407_v30 = vld [vmem:[#allocation8 + $0xf8] sm:$0xff] }
 0x259   : > { %1258 = vmatpush1.bf16.msra.mxu0 %v2175_v33  ;;  %v1429_v33 = vld [vmem:[#allocation8 + $0x1a8] sm:$0xff] }
 0x25a   : > { %1259 = vmatprep.subr.bf16.mxu0 %v2183_v34  ;;  %v1380_v34 = vld [vmem:[#allocation8 + $0x20] sm:$0xff] }
 0x25d   : > { %1260 = vmatpush1.bf16.msra.mxu0 %v2181_v35  ;;  %v1381_v35 = vld [vmem:[#allocation8 + $0x28] sm:$0xff] }
 0x25e   : > { %1261 = vmatprep.subr.bf16.mxu0 %v2189_v36  ;;  %v1962_v36 = vpack.c.bf16 %v1429_v33, %v1428_v31  ;;  %v1438_v31 = vld [vmem:[#allocation8 + $0x1f0] sm:$0xff] }
 0x261   : > { %1262 = vmatpush1.bf16.msra.mxu0 %v2187_v37  ;;  %v1932_v37 = vpack.c.bf16 %v1381_v35, %v1380_v34  ;;  %v1390_v35 = vld [vmem:[#allocation8 + $0x70] sm:$0xff] }
 0x262   : > { %1263 = vmatprep.subr.bf16.mxu0 %v2195_v38  ;;  %v1412_v38 = vld [vmem:[#allocation8 + $0x120] sm:$0xff] }
 0x265   : > { %1264 = vmatpush1.bf16.msra.mxu0 %v2193_v39  ;;  %v1413_v39 = vld [vmem:[#allocation8 + $0x128] sm:$0xff] }
 0x266   : > { %1265 = vmatprep.subr.bf16.mxu0 %v2201_v41  ;;  %v1964_v40 = vpack.c.bf16 %v1413_v39, %v1412_v38  ;;  %v1398_v41 = vld [vmem:[#allocation8 + $0xb0] sm:$0xff]  ;;  %v1423_v39 = vld [vmem:[#allocation8 + $0x178] sm:$0xff] }
 0x267   : > { %v1934_v44 = vpack.c.bf16 %v1399_v42, %v1398_v41  ;;  %v864_v41 = vsub.s32 2, %v2633_v48  ;;  %v852_v42 = vld [vmem:[%s2729_s8] sm:$0xf] }
 0x269   : > { %1266 = vmatpush1.bf16.msra.mxu0 %v2199_v43  ;;  %v1430_v43 = vld [vmem:[#allocation8 + $0x1b0] sm:$0xff] }
 0x26a   : > { %1267 = vmatprep.subr.bf16.mxu0 %v2207_v45  ;;  %v1431_v45 = vld [vmem:[#allocation8 + $0x1b8] sm:$0xff] }
 0x26b   : > { %v1966_v50 = vpack.c.bf16 %v1431_v45, %v1430_v43  ;;  %v868_v43 = vsub.s32 3, %v2633_v48  ;;  %v865_v45 = vrot.slane %v852_v42, %v864_v41 }
 0x26d   : > { %1268 = vmatpush1.bf16.msra.mxu0 %v2205_v47  ;;  %v1383_v47 = vld [vmem:[#allocation8 + $0x38] sm:$0xff] }
 0x26e   : > { %1955 = vmatprep.subr.bf16.mxu0 %v1954_v12  ;;  %v1974_v12 = vpack.c.bf16 %v1435_v9, %v1434_v7 }
 0x303   : > { %v773_v54 = vpop.f32.mrb[0].mxu0 }
 0x304   : > { %v774_v55 = vadd.f32 %v773_v54, %v652_v52  ;;  %v775_v56 = vpop.f32.mrb[1].mxu0  ;;  %v1415_v54 = vld [vmem:[#allocation8 + $0x138] sm:$0xff] }
 0x305   : > { %v776_v57 = vadd.f32 %v775_v56, %v656_v53  ;;  %v777_v58 = vpop.f32.mrb[2].mxu0  ;;  %v1400_v56 = vld [vmem:[#allocation8 + $0xc0] sm:$0xff] }
 0x306   : > { %v778_v59 = vadd.f32 %v777_v58, %v652_v52  ;;  %v779_v60 = vpop.f32.mrb[3].mxu0  ;;  %v782_v62 = vmax.f32 %v774_v55, 0.0  ;;  %v1936_v52 = vpack.c.bf16 %v1383_v47, %v1382_v46  ;;  %v861_v46 = vrot.slane %v852_v42, %v2642_v51 }
 0x307   : > { %v780_v61 = vadd.f32 %v779_v60, %v656_v53  ;;  %v783_v0 = vmax.f32 %v776_v57, 0.0  ;;  %v1414_v53 = vld [vmem:[#allocation8 + $0x130] sm:$0xff]  ;;  %v1401_v57 = vld [vmem:[#allocation8 + $0xc8] sm:$0xff]  ;;  %v869_v47 = vrot.slane %v852_v42, %v868_v43 }
 0x308   : > { %v784_v63 = vmax.f32 %v778_v59, 0.0  ;;  %v1968_v55 = vpack.c.bf16 %v1415_v54, %v1414_v53  ;;  %v1938_v58 = vpack.c.bf16 %v1401_v57, %v1400_v56  ;;  %v1432_v59 = vld [vmem:[#allocation8 + $0x1c0] sm:$0xff]  ;;  %v1433_v60 = vld [vmem:[#allocation8 + $0x1c8] sm:$0xff] }
 0x309   : > { %v785_v2 = vmax.f32 %v780_v61, 0.0  ;;  %v1384_v61 = vld [vmem:[#allocation8 + $0x40] sm:$0xff] }
 0x30a   : > { %v786_v3 = vpack.c.bf16 %v784_v63, %v782_v62  ;;  %v1970_v62 = vpack.c.bf16 %v1433_v60, %v1432_v59  ;;  %v1385_v63 = vld [vmem:[#allocation8 + $0x48] sm:$0xff] }
 0x30b   : > { %v787_v4 = vpack.c.bf16 %v785_v2, %v783_v0  ;;  %v1416_v0 = vld [vmem:[#allocation8 + $0x140] sm:$0xff]  ;;  %v1417_v2 = vld [vmem:[#allocation8 + $0x148] sm:$0xff] }
 0x30d   : > { %1226 = vmatprep.mubr.bf16.mxu1 %v787_v4  ;;  %1269 = vmatprep.mubr.bf16.mxu0 %v787_v4  ;;  %v1972_v4 = vpack.c.bf16 %v1417_v2, %v1416_v0 }
 0x30e   : > { %1227 = vmatmul.mubr.bf16.vlgmr.msra.gmra.mrb[8].mxu1 %v786_v3  ;;  %1270 = vmatmul.mubr.bf16.vlgmr.msra.gmra.mrb[4].mxu0 %v786_v3  ;;  %v1940_v3 = vpack.c.bf16 %v1385_v63, %v1384_v61 }
 0x30f   : > { %1925 = vmatpush3.bf16.msra.mxu1 %v1924_v13  ;;  %1957 = vmatpush3.bf16.msra.mxu0 %v1956_v16  ;;  %v1944_v13 = vpack.c.bf16 %v1387_v11, %v1386_v10  ;;  %v1976_v16 = vpack.c.bf16 %v1419_v15, %v1418_v14 }
 0x310   : > { %1927 = vmatprep.subr.bf16.mxu1 %v1926_v20  ;;  %1959 = vmatprep.subr.bf16.mxu0 %v1958_v24  ;;  %v1946_v20 = vpack.c.bf16 %v1405_v18, %v1404_v17  ;;  %v1978_v24 = vpack.c.bf16 %v1437_v21, %v1436_v19 }
 0x313   : > { %1929 = vmatpush3.bf16.msra.mxu1 %v1928_v25  ;;  %1961 = vmatpush3.bf16.msra.mxu0 %v1960_v28  ;;  %v1948_v25 = vpack.c.bf16 %v1389_v23, %v1388_v22  ;;  %v1406_v28 = vld [vmem:[#allocation8 + $0xf0] sm:$0xff] }
 0x314   : > { %1931 = vmatprep.subr.bf16.mxu1 %v1930_v32  ;;  %1963 = vmatprep.subr.bf16.mxu0 %v1962_v36  ;;  %v1439_v32 = vld [vmem:[#allocation8 + $0x1f8] sm:$0xff]  ;;  %v1950_v33 = vpack.c.bf16 %v1407_v30, %v1406_v28 }
 0x315   : > { %v1982_v34 = vpack.c.bf16 %v1439_v32, %v1438_v31  ;;  %v1391_v36 = vld [vmem:[#allocation8 + $0x78] sm:$0xff] }
 0x316   : > { %v1952_v38 = vpack.c.bf16 %v1391_v36, %v1390_v35 }
 0x317   : > { %1933 = vmatpush3.bf16.msra.mxu1 %v1932_v37  ;;  %1965 = vmatpush3.bf16.msra.mxu0 %v1964_v40  ;;  %v1422_v37 = vld [vmem:[#allocation8 + $0x170] sm:$0xff] }
 0x318   : > { %1935 = vmatprep.subr.bf16.mxu1 %v1934_v44  ;;  %1967 = vmatprep.subr.bf16.mxu0 %v1966_v50  ;;  %v1984_v40 = vpack.c.bf16 %v1423_v39, %v1422_v37  ;;  %v857_v44 = vrot.slane %v852_v42, %v2636_v49 }
 0x31b   : > { %1937 = vmatpush3.bf16.msra.mxu1 %v1936_v52  ;;  %1969 = vmatpush3.bf16.msra.mxu0 %v1968_v55 }
 0x31c   : > { %1939 = vmatprep.subr.bf16.mxu1 %v1938_v58  ;;  %1971 = vmatprep.subr.bf16.mxu0 %v1970_v62 }
 0x31f   : > { %1941 = vmatpush3.bf16.msra.mxu1 %v1940_v3  ;;  %1973 = vmatpush3.bf16.msra.mxu0 %v1972_v4 }
 0x320   : > { %1943 = vmatprep.subr.bf16.mxu1 %v1942_v8  ;;  %1975 = vmatprep.subr.bf16.mxu0 %v1974_v12 }
 0x323   : > { %1945 = vmatpush3.bf16.msra.mxu1 %v1944_v13  ;;  %1977 = vmatpush3.bf16.msra.mxu0 %v1976_v16 }
 0x324   : > { %1947 = vmatprep.subr.bf16.mxu1 %v1946_v20  ;;  %1979 = vmatprep.subr.bf16.mxu0 %v1978_v24 }
 0x327   : > { %1949 = vmatpush3.bf16.msra.mxu1 %v1948_v25  ;;  %1981 = vmatpush3.bf16.msra.mxu0 %v1980_v29 }
 0x328   : > { %1951 = vmatprep.subr.bf16.mxu1 %v1950_v33  ;;  %1983 = vmatprep.subr.bf16.mxu0 %v1982_v34 }
 0x32b   : > { %1953 = vmatpush3.bf16.msra.mxu1 %v1952_v38  ;;  %1985 = vmatpush3.bf16.msra.mxu0 %v1984_v40 }
 0x3e1   : > { %v1228_v50 = vpop.f32.mrb[8].mxu1  ;;  %v1271_v52 = vpop.f32.mrb[4].mxu0 }
 0x3e2   : > { %v1229_v53 = vadd.f32 %v1228_v50, %v857_v44  ;;  %v1272_v54 = vadd.f32 %v1271_v52, %v865_v45  ;;  %v1230_v55 = vpop.f32.mrb[9].mxu1  ;;  %v1273_v56 = vpop.f32.mrb[5].mxu0 }
 0x3e3   : > { %v1231_v57 = vadd.f32 %v1230_v55, %v861_v46  ;;  %v1274_v58 = vadd.f32 %v1273_v56, %v869_v47  ;;  %v1232_v59 = vpop.f32.mrb[10].mxu1  ;;  %v1275_v60 = vpop.f32.mrb[6].mxu0 }
 0x3e4   : > { %v1233_v61 = vadd.f32 %v1232_v59, %v857_v44  ;;  %v1276_v62 = vadd.f32 %v1275_v60, %v865_v45  ;;  %v1234_v63 = vpop.f32.mrb[11].mxu1  ;;  %v1277_v0 = vpop.f32.mrb[7].mxu0  ;;  %v1280_v4 = vmax.f32 %v1229_v53, 0.0  ;;  %v1282_v5 = vmax.f32 %v1272_v54, 0.0 }
 0x3e5   : > { %v1235_v2 = vadd.f32 %v1234_v63, %v861_v46  ;;  %v1278_v3 = vadd.f32 %v1277_v0, %v869_v47  ;;  %v1281_v8 = vmax.f32 %v1231_v57, 0.0  ;;  %v1283_v9 = vmax.f32 %v1274_v58, 0.0 }
 0x3e6   : > { %v1284_v6 = vmax.f32 %v1233_v61, 0.0  ;;  %v1286_v7 = vmax.f32 %v1276_v62, 0.0  ;;  %v2391_v45 = vmov 1966171168  }
 0x3e7   : > { %v1285_v10 = vmax.f32 %v1235_v2, 0.0  ;;  %v1287_v11 = vmax.f32 %v1278_v3, 0.0  ;;  %v1344_v46 = vunpack.c.l.s4 %v2391_v45 }
 0x3e8   : > { %v1288_v12 = vpack.c.bf16 %v1284_v6, %v1280_v4  ;;  %v1290_v13 = vpack.c.bf16 %v1286_v7, %v1282_v5 }
 0x3e9   : > { %v1289_v14 = vpack.c.bf16 %v1285_v10, %v1281_v8  ;;  %v1291_v15 = vpack.c.bf16 %v1287_v11, %v1283_v9  ;;  %v1345_v58 = vunpack.c.0.s8 %v1344_v46  ;;  %v1332_v11 = vld [vmem:[#allocation2] sm:$0xf] }
 0x3ea   : > { %v1292_v16 = vunpack.i.l.bf16 %v1288_v12  ;;  %v1293_v17 = vunpack.i.h.bf16 %v1288_v12  ;;  %v1312_v18 = vunpack.i.l.bf16 %v1290_v13  ;;  %v1313_v19 = vunpack.i.h.bf16 %v1290_v13 }
 0x3eb   : > { %v1302_v20 = vunpack.i.l.bf16 %v1289_v14  ;;  %v1303_v21 = vunpack.i.h.bf16 %v1289_v14  ;;  %v1322_v22 = vunpack.i.l.bf16 %v1291_v15  ;;  %v1323_v23 = vunpack.i.h.bf16 %v1291_v15 }
 0x3ec   : > { %v1294_v24 = vmax.f32 %v1292_v16, %v1293_v17  ;;  %v1314_v25 = vmax.f32 %v1312_v18, %v1313_v19  ;;  %v1348_v4 = vsub.s32 %v1345_v58, %v2633_v48 }
 0x3ed   : > { %v1304_v26 = vmax.f32 %v1302_v20, %v1303_v21  ;;  %v1324_v27 = vmax.f32 %v1322_v22, %v1323_v23 }
 0x3ee   : > { %v1295_v28 = vrot.slane %v1294_v24, 4  ;;  %v1315_v29 = vrot.slane %v1314_v25, 4 }
 0x3ef   : > { %v1305_v30 = vrot.slane %v1304_v26, 4  ;;  %v1325_v31 = vrot.slane %v1324_v27, 4 }
 0x3f0   : > { %v1296_v32 = vmax.f32 %v1294_v24, %v1295_v28  ;;  %v1316_v33 = vmax.f32 %v1314_v25, %v1315_v29 }
 0x3f1   : > { %v1306_v34 = vmax.f32 %v1304_v26, %v1305_v30  ;;  %v1326_v35 = vmax.f32 %v1324_v27, %v1325_v31 }
 0x3f2   : > { %v1297_v36 = vrot.slane %v1296_v32, 2  ;;  %v1317_v37 = vrot.slane %v1316_v33, 2 }
 0x3f3   : > { %v1307_v38 = vrot.slane %v1306_v34, 2  ;;  %v1327_v39 = vrot.slane %v1326_v35, 2 }
 0x3f4   : > { %v1298_v40 = vmax.f32 %v1296_v32, %v1297_v36  ;;  %v1318_v42 = vmax.f32 %v1316_v33, %v1317_v37 }
 0x3f5   : > { %v1308_v44 = vmax.f32 %v1306_v34, %v1307_v38  ;;  %v1328_v47 = vmax.f32 %v1326_v35, %v1327_v39 }
 0x3f6   : > { %v1299_v50 = vrot.slane %v1298_v40, 1  ;;  %v1319_v52 = vrot.slane %v1318_v42, 1 }
 0x3f7   : > { %v1309_v53 = vrot.slane %v1308_v44, 1  ;;  %v1329_v54 = vrot.slane %v1328_v47, 1 }
 0x3f8   : > { %v1300_v55 = vmax.f32 %v1298_v40, %v1299_v50  ;;  %v1320_v56 = vmax.f32 %v1318_v42, %v1319_v52 }
 0x3f9   : > { %v1310_v57 = vmax.f32 %v1308_v44, %v1309_v53  ;;  %v1330_v59 = vmax.f32 %v1328_v47, %v1329_v54 }
 0x3fa   : > { %v1301_v60 = vpack.i.bf16 %v1300_v55, %v1300_v55  ;;  %v1321_v61 = vpack.i.bf16 %v1320_v56, %v1320_v56 }
 0x3fb   : > { %v1311_v62 = vpack.i.bf16 %v1310_v57, %v1310_v57  ;;  %v1331_v63 = vpack.i.bf16 %v1330_v59, %v1330_v59 }
 0x3fc   : > { %v1333_v0 = vunpack.c.l.bf16 %v1301_v60  ;;  %v1335_v2 = vunpack.c.l.bf16 %v1321_v61 }
 0x3fd   : > { %v1334_v3 = vunpack.c.l.bf16 %v1311_v62  ;;  %v1336_v5 = vunpack.c.l.bf16 %v1331_v63 }
 0x3ff   : > { %v1341_v6 = vcombine.low %v1333_v0, %v1334_v3  ;;  %v1342_v7 = vcombine.low %v1335_v2, %v1336_v5 }
 0x401   : > { %v1349_v8 = vrot.slane %v1341_v6, %v1348_v4  ;;  %v1356_v9 = vrot.slane %v1342_v7, %v1348_v4 }
 0x403   : > { %v1357_v10 = vcombine.low %v1349_v8, %v1356_v9 }
 0x405   : > { %v1364_v12 = vrot.slane %v1357_v10, %v1348_v4 }
 0x407   : > { %v1366_v13 = vmax.f32 %v1332_v11, %v1364_v12 }
 0x409   : > { %1371 = vst.msk [vmem:[#allocation2] sm:$0xf] %vm2623_vm3, %v1366_v13 }
 0x410   : > { %v1375_v14 = vld [vmem:[#allocation2] sm:$0xf] }
 0x411   : > { %v1449_v15 = vrot.slane %v1375_v14, %v2642_v51  ;;  %v1457_v16 = vrot.slane %v1375_v14, %v868_v43  ;;  %v1445_v17 = vrot.slane %v1375_v14, %v2636_v49  ;;  %v1453_v18 = vrot.slane %v1375_v14, %v864_v41  ;;  %v1440_v51 = vld [vmem:[%s2731_s10] sm:$0x1] }
 0x413   : > { %1526 = vmatprep.mubr.f32.mxu1 %v1449_v15  ;;  %1596 = vmatprep.mubr.f32.mxu0 %v1457_v16 }
 0x414   : > { %1527 = vmatmul.mubr.f32.vlgmr.msra.gmra.mrb[12].mxu1 %v1445_v17  ;;  %1597 = vmatmul.mubr.f32.vlgmr.msra.gmra.mrb[8].mxu0 %v1453_v18 }
 0x4e7   : > { %v1864_v19 = vpop.f32.mrb[12].mxu1  ;;  %v1899_v1 = vpop.f32.mrb[8].mxu0 }
 0x4e8   : > { %v1865_v20 = vpop.f32.mrb[13].mxu1  ;;  %v1900_v21 = vpop.f32.mrb[9].mxu0 }
 0x4e9   : > { %v1866_v43 = vadd.f32 %v1865_v20, %v1864_v19  ;;  %v1901_v22 = vadd.f32 %v1900_v21, %v1899_v1 }
 0x4eb   : > { %v1529_v48 = vadd.f32 %v1866_v43, %v1440_v51 }
 0x4ed   : > { %v1599_v49 = vadd.f32 %v1901_v22, %v1529_v48 }
 0x4ef   : > { %1602 = vst [vmem:[%s445_s28] sm:$0x1] %v1599_v49 }
 0x4f0   : > { %2305 = shalt.err (!%p2302_p6)
}
 0x4f1   : > { %s2306_s14 = scalar_lea.hbm %s2674_s11, 16  ;;  %s2310_s21 = scalar_lea.hbm %s2765_s26, 32 }
 0x4f2   : > { %p2307_p7 = scmp.ne.s32.totalorder %s2674_s11, %s2306_s14  ;;  %p2311_p4 = scmp.lt.u32.totalorder %s2674_s11, %s2765_s26 }
 0x4f3   : > { %p2312_p8 = scmp.lt.u32.totalorder %s2310_s21, %s2306_s14  ;;  %p2314_p13 = scmp.lt.u32.totalorder %s2306_s14, %s2674_s11 }
 0x4f4   : > { %p2308_p9 = pnand %p2307_p7, %p2766_p10 }
 0x4f5   : > { %p2313_p1 = por %p2312_p8, %p2311_p4 }
 0x4f6   : > { %p2309_p12 = pneg %p2308_p9 }
 0x4f7   : > { %p2315_p11 = por %p2314_p13, %p2313_p1 }
 0x4f9   : > { %p2316_p0 = pnand %p2315_p11, %p2309_p12 }
 0x4fb   : > { %2319 = shalt.err (!%p2316_p0)
}
 0x4fc   : > { %1998 = dma.vmem_to_hbm [thread:$0]  (%p2766_p10), %s2676_s23, 16, %s2674_s11, %s1604_s15  }
 0x4fd PF: > { %s2767_s29 = sld [smem:[#allocation16_spill]]  ;;  %s2768_s24 = sld [smem:[#allocation13_spill]] }
 0x4fe   : > { %s2769_s28 = sld [smem:[#allocation18_spill]] }
 0x503   : > { %p2020_p2 = scmp.ge.s32.totalorder %s2767_s29, 2  ;;  %s1628_s25 = sand.u32 1, %s2768_s24  }
 0x504   : > { %p2770_p3 = scmp.ne.s32.totalorder %s2769_s28, 0  ;;  %s1629_s19 = scalar_lea.sflag [#allocation5], %s1628_s25 }
 0x506   : > { %p2011_p5 = pnand %p2020_p2, %p2770_p3 }
 0x508   : > { %2353 = dma.done.wait (!%p2011_p5), %s1629_s19, 16  }
 0x509   : > { %2355 = vsyncadd (!%p2011_p5), %s1629_s19, 4294967280  ;;  %s26_s22 = sadd.s32 1, %s2767_s29   ;;  %s2771_s7 = sld [smem:[#allocation14_spill]] }
 0x50a   : > { %p23_p6 = scmp.ge.s32.totalorder %s26_s22, 4   ;;  %s2772_s19 = sld [smem:[#allocation19_spill]] }
 0x50b   : > { %s2773_s20 = sld [smem:[#allocation15_spill]]  ;;  %s2774_s21 = sld [smem:[#allocation17_spill]] }
 0x50c   : > { %s2775_s17 = smov %s2362_s18  ;;  %25 = sbr.rel (!%p23_p6) target bundleno = 9 (0x9), region = 120 }
 0x50f   : > { %s2776_s18 = smov %s2771_s7 }
 0x513   :  { %1633 = vsyncpa [#allocation4], 1 }
 0x514   :  { %1635 = vsyncpa [#allocation4 + $0x1], 1 }
 0x515   :  { %1636 = vsyncpa [#allocation7], 1 }
 0x516   :  { %1637 = vsyncpa [#allocation5], 1 }
 0x517   :  { %1639 = vsyncpa [#allocation5 + $0x1], 1 }

</bundles_post_ra>
